<compile_context>
chip_gen: v5e
topology: v5e:2x2
jax: 0.10.0
libtpu: 0.0.40
codegen_flags: <defaults>
</compile_context>

<pallas_src>
import functools
import math

import jax
import jax.numpy as jnp
from jax.experimental import pallas as pl
from jax.experimental.pallas import tpu as pltpu

_LANE = 128
_SUBLANE = 8


def _round_up(v, m):
    return ((v + m - 1) // m) * m


def _sublane_granule(dtype):
    # Native sublane tiling scales with packing (f32: 8, bf16: 16, int8: 32).
    return _SUBLANE * max(1, 4 // jnp.dtype(dtype).itemsize)


def _vmem_budget_and_limit():
    """(double-buffered tile budget, scoped VMEM limit) in bytes, per chip gen."""
    try:
        cap = int(pltpu.get_tpu_info().vmem_capacity_bytes)
    except Exception:
        cap = 64 * 1024 * 1024  # conservative fallback (v7x-sized)
    if cap >= 128 * 1024 * 1024:  # v5e / v6e: 128 MiB physical VMEM
        return 24 * 1024 * 1024, 64 * 1024 * 1024
    # v7x (64 MiB per core) or unknown: stay conservative.
    return min(cap // 4, 12 * 1024 * 1024), min(cap // 2, 32 * 1024 * 1024)


# --------------------------------------------------------------------------
# Narrow path: C < 128.  Stream (TR, C) blocks straight from HBM (no wrapper
# transpose); reduce over the last axis in-kernel.  Lane under-utilization is
# hidden under the DMA, and total HBM traffic is exactly one read of x.
# --------------------------------------------------------------------------
def _maxnorm_narrow_kernel(x_ref, o_ref):
    o_ref[...] = jnp.max(jnp.abs(x_ref[...]), axis=-1, keepdims=True)


def _maxnorm_narrow(x2d):
    rows, cols = x2d.shape
    dt = x2d.dtype
    itemsize = dt.itemsize
    budget, limit = _vmem_budget_and_limit()
    gran = _sublane_granule(dt)

    # VMEM cost per block row: lanes pad to 128, double-buffered input.
    bytes_per_row = _LANE * itemsize
    tr_vmem = max(gran, (budget // (2 * bytes_per_row)) // gran * gran)
    # >= 2 row tiles when possible so the parallel axis feeds both v7x cores.
    tr = max(gran, min(tr_vmem, _round_up(pl.cdiv(rows, 2), gran)))
    grid = (pl.cdiv(rows, tr),)

    return pl.pallas_call(
        _maxnorm_narrow_kernel,
        out_shape=jax.ShapeDtypeStruct((rows, 1), dt),
        grid=grid,
        in_specs=[pl.BlockSpec((tr, cols), lambda i: (i, 0))],
        out_specs=pl.BlockSpec((tr, 1), lambda i: (i, 0)),
        compiler_params=pltpu.CompilerParams(
            dimension_semantics=("parallel",),
            vmem_limit_bytes=limit,
        ),
        cost_estimate=pl.CostEstimate(
            flops=2 * rows * cols,
            transcendentals=0,
            bytes_accessed=rows * cols * itemsize + rows * itemsize,
        ),
    )(x2d)  # (rows, 1)


# --------------------------------------------------------------------------
# Wide path: C >= 128.  Row tiles x column tiles; reduction (column) axis is
# the innermost "arbitrary" grid axis.  Running max lives in a (tr, 128) VMEM
# scratch folded on the VALU; the single XLU cross-lane reduce + output store
# happen only on the last column tile.
# --------------------------------------------------------------------------
def _maxnorm_wide_kernel(x_ref, o_ref, acc_ref, *, cols, col_tile, needs_mask):
    j = pl.program_id(1)
    nj = pl.num_programs(1)

    @pl.when(j == 0)
    def _():
        acc_ref[...] = jnp.zeros_like(acc_ref)  # 0 is the identity: |x| >= 0

    def fold(masked):
        # Lane-aligned 128-wide static slices -> pure VALU maximums; no
        # per-step cross-lane reduce, no lane-width-1 accumulator traffic.
        for k in range(col_tile // _LANE):
            chunk = jnp.abs(x_ref[:, k * _LANE:(k + 1) * _LANE])
            if masked:
                col = (j * col_tile + k * _LANE
                       + jax.lax.broadcasted_iota(jnp.int32, chunk.shape, 1))
                chunk = jnp.where(col < cols, chunk, jnp.zeros_like(chunk))
            acc_ref[...] = jnp.maximum(acc_ref[...], chunk)

    if needs_mask:
        # Padded columns only exist in the last column tile.
        @pl.when(j == nj - 1)
        def _():
            fold(True)

        @pl.when(j < nj - 1)
        def _():
            fold(False)
    else:
        fold(False)

    @pl.when(j == nj - 1)
    def _():
        # Single cross-lane reduce + store per row tile.
        o_ref[...] = jnp.max(acc_ref[...], axis=-1, keepdims=True)


def _maxnorm_wide(x2d):
    rows, cols = x2d.shape
    dt = x2d.dtype
    itemsize = dt.itemsize
    budget, limit = _vmem_budget_and_limit()
    gran = _sublane_granule(dt)

    # Row tile: cap at 1024, but make sure the parallel row axis has >= 2
    # iterations when possible (v7x megacore).
    tr = max(gran, min(1024, _round_up(pl.cdiv(rows, 2), gran)))

    # Column tile: double-buffered input + (tr, 128) accumulator must fit the
    # budget; multiple of 128; capped to keep the static chunk unroll small.
    acc_bytes = tr * _LANE * itemsize
    tc_cap = (budget - acc_bytes) // (2 * tr * itemsize)
    tc_cap = max(_LANE, (tc_cap // _LANE) * _LANE)
    tc = min(_round_up(cols, _LANE), tc_cap, 4096)
    grid = (pl.cdiv(rows, tr), pl.cdiv(cols, tc))  # reduction axis last
    needs_mask = (cols % tc) != 0

    kernel = functools.partial(
        _maxnorm_wide_kernel, cols=cols, col_tile=tc, needs_mask=needs_mask)

    return pl.pallas_call(
        kernel,
        out_shape=jax.ShapeDtypeStruct((rows, 1), dt),
        grid=grid,
        in_specs=[pl.BlockSpec((tr, tc), lambda i, j: (i, j))],
        out_specs=pl.BlockSpec((tr, 1), lambda i, j: (i, 0)),
        scratch_shapes=[pltpu.VMEM((tr, _LANE), dt)],  # running max, input dtype
        compiler_params=pltpu.CompilerParams(
            dimension_semantics=("parallel", "arbitrary"),
            vmem_limit_bytes=limit,
        ),
        cost_estimate=pl.CostEstimate(
            flops=2 * rows * cols,
            transcendentals=0,
            bytes_accessed=rows * cols * itemsize + rows * itemsize,
        ),
    )(x2d)  # (rows, 1)


def maximum_norm(x: jax.Array) -> jax.Array:
    """Equivalent of torch.max(torch.abs(x), dim=-1)[0]."""
    *lead, last = x.shape
    rows = math.prod(lead) if lead else 1
    x2d = x.reshape(rows, last)
    if last < _LANE:
        out2d = _maxnorm_narrow(x2d)
    else:
        out2d = _maxnorm_wide(x2d)
    return out2d.reshape(tuple(lead))


if __name__ == "__main__":
    key = jax.random.PRNGKey(0)

    # Primary example consistent with the module: NCHW input, reduce over W.
    x = jax.random.normal(key, (2, 4, 16, 16), dtype=jnp.float32)
    out = maximum_norm(x)
    jax.block_until_ready(out)
    ref = jnp.max(jnp.abs(x), axis=-1)
    assert out.shape == ref.shape == (2, 4, 16), out.shape
    assert out.dtype == x.dtype
    assert jnp.allclose(out, ref), "narrow-path mismatch vs reference"

    k1, k2, k3 = jax.random.split(key, 3)

    # Wide path (C >= 128), exact column tiles.
    xw = jax.random.normal(k1, (2, 8, 384), dtype=jnp.float32)
    ow = maximum_norm(xw)
    jax.block_until_ready(ow)
    assert jnp.allclose(ow, jnp.max(jnp.abs(xw), axis=-1)), "wide-path mismatch"

    # Wide path with a padded (masked) last column tile.
    xm = jax.random.normal(k2, (64, 200), dtype=jnp.float32)
    om = maximum_norm(xm)
    jax.block_until_ready(om)
    assert jnp.allclose(om, jnp.max(jnp.abs(xm), axis=-1)), "masked-col mismatch"

    # Narrow path, bf16, non-multiple row count (partial row block).
    xb = jax.random.normal(k3, (3, 5, 16), dtype=jnp.bfloat16)
    ob = maximum_norm(xb)
    jax.block_until_ready(ob)
    assert ob.dtype == jnp.bfloat16
    assert jnp.allclose(ob, jnp.max(jnp.abs(xb), axis=-1)), "bf16 mismatch"

    print("KERNEL_OK")
</pallas_src>

<mosaic_0001>
module attributes {stable_mosaic.version = 11 : i64} {
  func.func @_maxnorm_narrow_kernel(%arg0: i32, %arg1: memref<64x16xf32, #tpu.memory_space<vmem>>, %arg2: memref<64x1xf32, #tpu.memory_space<vmem>>) attributes {dimension_semantics = [#tpu.dimension_semantics<parallel>], iteration_bounds = array<i64: 2>, scalar_prefetch = 0 : i64, scratch_operands = 0 : i64, tpu.core_type = #tpu.core_type<tc>, window_params = [{transform_indices = @transform_0, window_bounds = array<i64: 64, 16>}, {transform_indices = @transform_1, window_bounds = array<i64: 64, 1>}]} {
    %c0 = arith.constant 0 : index
    %c0_0 = arith.constant 0 : index
    %0 = vector.load %arg1[%c0, %c0_0] : memref<64x16xf32, #tpu.memory_space<vmem>>, vector<64x16xf32>
    %1 = math.absf %0 : vector<64x16xf32>
    %cst = arith.constant dense<0xFF800000> : vector<64xf32>
    %2 = vector.multi_reduction <maximumf>, %1, %cst [1] : vector<64x16xf32> to vector<64xf32>
    %3 = vector.shape_cast %2 : vector<64xf32> to vector<64x1xf32>
    %c0_1 = arith.constant 0 : index
    %c0_2 = arith.constant 0 : index
    %4 = vector.load %arg2[%c0_1, %c0_2] : memref<64x1xf32, #tpu.memory_space<vmem>>, vector<64x1xf32>
    tpu.vector_store %arg2[%c0_1, %c0_2], %3 {strides = array<i32>} : memref<64x1xf32, #tpu.memory_space<vmem>>, vector<64x1xf32>,
    return
  }
  func.func @transform_0(%arg0: i32) -> (i32, i32) {
    %c0_i32 = arith.constant 0 : i32
    %c0_i32_0 = arith.constant 0 : i32
    return %arg0, %c0_i32 : i32, i32
  }
  func.func @transform_1(%arg0: i32) -> (i32, i32) {
    %c0_i32 = arith.constant 0 : i32
    %c0_i32_0 = arith.constant 0 : i32
    return %arg0, %c0_i32 : i32, i32
  }
}

</mosaic_0001>

<bundles_post_ra>
// kernel: tpu_custom_call.1
= control target key start
LH: loop header
LB: loop body
LE: loop exit
PB: predicated region body
PF: predicated region fallthrough
CT: control target
= control target key end

     0   :  { %s263_s6 = smov 0   ;;  %s303_s0 = inlined_call_operand.vmem [shape: f32[128,16], index: 0, kind: input, shape index: {}]   ;;  %s304_s1 = inlined_call_operand.vmem [shape: f32[128,1], index: 1, kind: output, shape index: {}]  }
   0x1 LB: > { %s226_s7 = sadd.s32 4294967295, %s251_s6   ;;  %p230_p0 = scmp.ge.s32.totalorder %s251_s6, 1  ;;  %s251_s6 = sphi %s263_s6, %s11_s6  }
   0x2   : > { %p88_p1 = scmp.lt.s32.totalorder %s251_s6, 3 }
   0x4   : > { %p89_p2 = pnand %p230_p0, %p88_p1 }
   0x5   : > { %s231_s8 = sshll.u32 (!%p89_p2), %s226_s7, 3 }
   0x6   : > { %92 = sbr.rel (%p89_p2) target bundleno = 152 (0x98), region = 24  ;;  %p109_p3 = scmp.lt.s32.totalorder (!%p89_p2), %s231_s8, 15 }
   0xb   : > { %s306_s8 = smov (!%p109_p3, %s231_s8), 15  ;;  %vm136_vm0 = vcmask 130048   ;;  %vm161_vm1 = vcmask 7168  }
   0xc   : > { %s232_s9 = sshll.u32 %s306_s8, 3 }
   0xd   : > { %s112_s12 = scalar_lea.vmem %s303_s0, %s232_s9  ;;  %s118_s15 = scalar_lea.vmem %s304_s1, %s232_s9 }
   0xe   : > { %v122_v0 = vld [vmem:[%s112_s12 + $0x10] sm:$0xff]  ;;  %v120_v1 = vld [vmem:[%s112_s12] sm:$0xff]  ;;  %v123_v6 = vld [vmem:[%s112_s12 + $0x18] sm:$0xff] }
   0xf   : > { %v124_v2 = vld [vmem:[%s112_s12 + $0x20] sm:$0xff]  ;;  %v130_v3 = vand.u32 2147483647, %v122_v0  ;;  %v128_v4 = vand.u32 2147483647, %v120_v1  ;;  %v121_v7 = vld [vmem:[%s112_s12 + $0x8] sm:$0xff] }
  0x10   : > { %v132_v5 = vand.u32 2147483647, %v124_v2  ;;  %v125_v11 = vld [vmem:[%s112_s12 + $0x28] sm:$0xff]  ;;  %v131_v12 = vand.u32 2147483647, %v123_v6  ;;  %v127_v18 = vld [vmem:[%s112_s12 + $0x38] sm:$0xff] }
  0x11   : > { %v143_v8 = vsel %vm136_vm0, %v130_v3, -inf  ;;  %v137_v9 = vsel %vm136_vm0, %v128_v4, -inf  ;;  %v129_v13 = vand.u32 2147483647, %v121_v7  ;;  %v133_v14 = vand.u32 2147483647, %v125_v11 }
  0x12   : > { %v149_v10 = vsel %vm136_vm0, %v132_v5, -inf  ;;  %144 = vmax.xlane.f32.xlu1 %v143_v8  ;;  %138 = vmax.xlane.f32.xlu0 %v137_v9  ;;  %v146_v15 = vsel %vm136_vm0, %v131_v12, -inf  ;;  %v126_v19 = vld [vmem:[%s112_s12 + $0x30] sm:$0xff]  ;;  %v135_v20 = vand.u32 2147483647, %v127_v18 }
  0x13   : > { %150 = vmax.xlane.f32.xlu2 %v149_v10  ;;  %v140_v16 = vsel %vm136_vm0, %v129_v13, -inf  ;;  %v152_v17 = vsel %vm136_vm0, %v133_v14, -inf  ;;  %v134_v21 = vand.u32 2147483647, %v126_v19 }
  0x14   : > { %v158_v22 = vsel %vm136_vm0, %v135_v20, -inf }
  0x15   : > { %v155_v23 = vsel %vm136_vm0, %v134_v21, -inf }
  0x1a   : > { %147 = vmax.xlane.f32.xlu1 %v146_v15  ;;  %141 = vmax.xlane.f32.xlu0 %v140_v16 }
  0x1b   : > { %153 = vmax.xlane.f32.xlu2 %v152_v17 }
  0x22   : > { %159 = vmax.xlane.f32.xlu1 %v158_v22  ;;  %156 = vmax.xlane.f32.xlu0 %v155_v23 }
  0x85   : > { %v145_v24 = vpop.xlane.xlu1 %144  ;;  %v139_v25 = vpop.xlane.xlu0 %138 }
  0x86   : > { %164 = vst.msk [vmem:[%s118_s15 + $0x10] sm:$0xff] %vm161_vm1, %v145_v24  ;;  %v151_v26 = vpop.xlane.xlu2 %150 }
  0x87   : > { %162 = vst.msk [vmem:[%s118_s15] sm:$0xff] %vm161_vm1, %v139_v25 }
  0x88   : > { %166 = vst.msk [vmem:[%s118_s15 + $0x20] sm:$0xff] %vm161_vm1, %v151_v26 }
  0x8d   : > { %v148_v27 = vpop.xlane.xlu1 %147  ;;  %v142_v28 = vpop.xlane.xlu0 %141 }
  0x8e   : > { %165 = vst.msk [vmem:[%s118_s15 + $0x18] sm:$0xff] %vm161_vm1, %v148_v27  ;;  %v154_v29 = vpop.xlane.xlu2 %153 }
  0x8f   : > { %163 = vst.msk [vmem:[%s118_s15 + $0x8] sm:$0xff] %vm161_vm1, %v142_v28 }
  0x90   : > { %167 = vst.msk [vmem:[%s118_s15 + $0x28] sm:$0xff] %vm161_vm1, %v154_v29 }
  0x95   : > { %v160_v30 = vpop.xlane.xlu1 %159  ;;  %v157_v31 = vpop.xlane.xlu0 %156 }
  0x96   : > { %169 = vst.msk [vmem:[%s118_s15 + $0x38] sm:$0xff] %vm161_vm1, %v160_v30 }
  0x97   : > { %168 = vst.msk [vmem:[%s118_s15 + $0x30] sm:$0xff] %vm161_vm1, %v157_v31 }
  0x98 PF: > { %s11_s6 = sadd.s32 1, %s251_s6  }
  0x99   : > { %p8_p4 = scmp.ge.s32.totalorder %s11_s6, 4  }
  0x9b   :  { %10 = sbr.rel (!%p8_p4) target bundleno = 1 (0x1), region = 54 }

</bundles_post_ra>
